<compile_context>
chip_gen: v7x
topology: tpu7x:2x2x1
jax: 0.10.0
libtpu: 0.0.40
codegen_flags: <defaults>
</compile_context>

<pallas_src>
import functools

import jax
import jax.numpy as jnp
from jax import lax
from jax.experimental import pallas as pl
from jax.experimental.pallas import tpu as pltpu


def _round_up(n: int, m: int) -> int:
    return ((n + m - 1) // m) * m


def chromosome_kernel(x_ref, w1_ref, b1_ref, w2_ref, b2_ref, w3_ref, b3_ref,
                      o_ref):
    # x tile: [TILE_B, num_inputs]; cast only if the caller passed non-f32 x.
    x = x_ref[...]
    if x.dtype != jnp.float32:
        x = x.astype(jnp.float32)

    # layer1: (first, num_inputs) x (TILE_B, num_inputs)^T -> (first, TILE_B)
    # NT dot_general (contract both operands on their last dim).
    h1 = lax.dot_general(w1_ref[...], x, (((1,), (1,)), ((), ())),
                         preferred_element_type=jnp.float32)
    h1 = jnp.maximum(h1 + b1_ref[...], 0.0)          # b1: (first, 1) lane-bcast

    # layer2: (second, first) @ (first, TILE_B) -> (second, TILE_B)
    h2 = jnp.dot(w2_ref[...], h1, preferred_element_type=jnp.float32)
    h2 = jnp.maximum(h2 + b2_ref[...], 0.0)

    # layer3 (class axis padded to 8 sublanes in the wrapper):
    # (num_out_p, second) @ (second, TILE_B) -> (num_out_p, TILE_B)
    logits = jnp.dot(w3_ref[...], h2, preferred_element_type=jnp.float32)
    logits = logits + b3_ref[...]                     # padded rows: -1e30

    # softmax over the (sublane) class axis; batch stays on the lane axis.
    # Padded class rows contribute exp(-huge) == 0, so real classes normalize
    # exactly as in the unpadded softmax. Exact division => rows sum to 1.
    m = jnp.max(logits, axis=0, keepdims=True)
    e = jnp.exp(logits - m)
    denom = jnp.sum(e, axis=0, keepdims=True)
    o_ref[...] = (e / denom).astype(o_ref.dtype)


def chromosome_forward(x, params, *, max_tile_b=8192):
    """x: [batch, num_inputs] float32. params: PyTorch-layout weights/biases."""
    w1, b1 = params["w1"], params["b1"]   # (first, num_inputs), (first,)
    w2, b2 = params["w2"], params["b2"]   # (second, first),     (second,)
    w3, b3 = params["w3"], params["b3"]   # (num_out, second),   (num_out,)

    batch, num_inputs = x.shape
    first = w1.shape[0]
    second = w2.shape[0]
    num_outputs = w3.shape[0]

    # Lane-dense batch tile (multiple of 128), capped so the lane-padded x
    # double buffer (~tile_b * 512 B * 2) stays inside the default scoped VMEM
    # of every TPU generation.
    tile_b = min(max_tile_b, _round_up(batch, 128))
    grid = (pl.cdiv(batch, tile_b),)      # partial last block, no jnp.pad

    # Pad the class axis to a full 8-sublane vreg: zero weight rows and a huge
    # negative bias so the padded logits vanish under exp().
    num_out_p = _round_up(num_outputs, 8)
    w3p = jnp.zeros((num_out_p, second), jnp.float32).at[:num_outputs, :].set(
        w3.astype(jnp.float32))
    b3p = jnp.full((num_out_p, 1), -1e30, jnp.float32).at[:num_outputs, 0].set(
        b3.astype(jnp.float32))

    # Biases as column vectors so they broadcast over the lane (batch) axis.
    b1c = b1.reshape(-1, 1).astype(jnp.float32)
    b2c = b2.reshape(-1, 1).astype(jnp.float32)

    def const_spec(shape):
        # Weights / biases: same block every step -> fetched once, VMEM-resident.
        return pl.BlockSpec(shape, lambda i: (0, 0))

    flops = 2 * batch * (num_inputs * first + first * second
                         + second * num_outputs)
    param_bytes = 4 * (w1.size + w2.size + w3p.size
                       + b1c.size + b2c.size + b3p.size)
    bytes_accessed = 4 * batch * (num_inputs + num_out_p) + param_bytes
    cost = pl.CostEstimate(flops=int(flops),
                           transcendentals=int(batch * num_out_p),
                           bytes_accessed=int(bytes_accessed))

    out_t = pl.pallas_call(
        chromosome_kernel,
        out_shape=jax.ShapeDtypeStruct((num_out_p, batch), jnp.float32),
        grid=grid,
        in_specs=[
            pl.BlockSpec((tile_b, num_inputs), lambda i: (i, 0)),
            const_spec(w1.shape), const_spec(b1c.shape),
            const_spec(w2.shape), const_spec(b2c.shape),
            const_spec(w3p.shape), const_spec(b3p.shape),
        ],
        out_specs=pl.BlockSpec((num_out_p, tile_b), lambda i: (0, i)),
        compiler_params=pltpu.CompilerParams(
            dimension_semantics=("parallel",)),
        cost_estimate=cost,
    )(x, w1, b1c, w2, b2c, w3p, b3p)

    # Tiny layout-plumbing slice+transpose back to (batch, num_outputs).
    return out_t[:num_outputs, :batch].T


def init_params(key, num_inputs, num_outputs, first=8, second=4):
    """Deterministic synthetic init (PyTorch-like uniform ranges, (out,in) layout)."""
    ks = jax.random.split(key, 6)

    def lin(kw, kb, fan_in, fan_out):
        bound = 1.0 / jnp.sqrt(fan_in)
        w = jax.random.uniform(kw, (fan_out, fan_in), jnp.float32, -bound, bound)
        b = jax.random.uniform(kb, (fan_out,), jnp.float32, -bound, bound)
        return w, b

    w1, b1 = lin(ks[0], ks[1], num_inputs, first)
    w2, b2 = lin(ks[2], ks[3], first, second)
    w3, b3 = lin(ks[4], ks[5], second, num_outputs)
    return {"w1": w1, "b1": b1, "w2": w2, "b2": b2, "w3": w3, "b3": b3}


def reference_forward(x, p):
    h = jax.nn.relu(x @ p["w1"].T + p["b1"])
    h = jax.nn.relu(h @ p["w2"].T + p["b2"])
    return jax.nn.softmax(h @ p["w3"].T + p["b3"], axis=-1)


if __name__ == "__main__":
    key = jax.random.PRNGKey(0)
    k_x, k_x2, k_p = jax.random.split(key, 3)

    num_inputs, num_outputs = 16, 4
    params = init_params(k_p, num_inputs, num_outputs, first=8, second=4)

    fwd = jax.jit(functools.partial(chromosome_forward, params=params))
    # Small tiles to exercise a multi-step pipelined grid + partial edge block.
    fwd_small_tiles = jax.jit(functools.partial(chromosome_forward,
                                                params=params, max_tile_b=256))

    # Small batch (single partial 128-row tile).
    batch = 8
    x = jax.random.normal(k_x, (batch, num_inputs), jnp.float32)
    out = jax.block_until_ready(fwd(x))
    ref = reference_forward(x, params)
    assert out.shape == (batch, num_outputs)
    assert jnp.allclose(out, ref, atol=2e-3, rtol=2e-3), "mismatch vs reference"
    assert jnp.allclose(jnp.sum(out, axis=-1), 1.0, atol=1e-4)

    # Larger batch: default path (one big tile) and multi-step grid path.
    batch2 = 1000
    x2 = jax.random.normal(k_x2, (batch2, num_inputs), jnp.float32)
    ref2 = reference_forward(x2, params)

    out2 = jax.block_until_ready(fwd(x2))
    assert out2.shape == (batch2, num_outputs)
    assert jnp.allclose(out2, ref2, atol=2e-3, rtol=2e-3), "mismatch (big)"
    assert jnp.allclose(jnp.sum(out2, axis=-1), 1.0, atol=1e-4)

    out3 = jax.block_until_ready(fwd_small_tiles(x2))
    assert out3.shape == (batch2, num_outputs)
    assert jnp.allclose(out3, ref2, atol=2e-3, rtol=2e-3), "mismatch (multi-step)"
    assert jnp.allclose(jnp.sum(out3, axis=-1), 1.0, atol=1e-4)

    print("KERNEL_OK")
</pallas_src>

<mosaic_0001>
module attributes {stable_mosaic.version = 11 : i64} {
  func.func @chromosome_kernel(%arg0: i32, %arg1: memref<128x16xf32, #tpu.memory_space<vmem>>, %arg2: memref<8x16xf32, #tpu.memory_space<vmem>>, %arg3: memref<8x1xf32, #tpu.memory_space<vmem>>, %arg4: memref<4x8xf32, #tpu.memory_space<vmem>>, %arg5: memref<4x1xf32, #tpu.memory_space<vmem>>, %arg6: memref<8x4xf32, #tpu.memory_space<vmem>>, %arg7: memref<8x1xf32, #tpu.memory_space<vmem>>, %arg8: memref<8x128xf32, #tpu.memory_space<vmem>>) attributes {dimension_semantics = [#tpu.dimension_semantics<parallel>], iteration_bounds = array<i64: 1>, scalar_prefetch = 0 : i64, scratch_operands = 0 : i64, tpu.core_type = #tpu.core_type<tc>, window_params = [{transform_indices = @transform_0, window_bounds = array<i64: 128, 16>}, {pipeline_mode = #tpu.pipeline_mode<synchronous>, transform_indices = @transform_1, window_bounds = array<i64: 8, 16>}, {pipeline_mode = #tpu.pipeline_mode<synchronous>, transform_indices = @transform_2, window_bounds = array<i64: 8, 1>}, {pipeline_mode = #tpu.pipeline_mode<synchronous>, transform_indices = @transform_3, window_bounds = array<i64: 4, 8>}, {pipeline_mode = #tpu.pipeline_mode<synchronous>, transform_indices = @transform_4, window_bounds = array<i64: 4, 1>}, {pipeline_mode = #tpu.pipeline_mode<synchronous>, transform_indices = @transform_5, window_bounds = array<i64: 8, 4>}, {pipeline_mode = #tpu.pipeline_mode<synchronous>, transform_indices = @transform_6, window_bounds = array<i64: 8, 1>}, {transform_indices = @transform_7, window_bounds = array<i64: 8, 128>}]} {
    %c0 = arith.constant 0 : index
    %c0_0 = arith.constant 0 : index
    %0 = vector.load %arg1[%c0, %c0_0] : memref<128x16xf32, #tpu.memory_space<vmem>>, vector<128x16xf32>
    %c0_1 = arith.constant 0 : index
    %c0_2 = arith.constant 0 : index
    %1 = vector.load %arg2[%c0_1, %c0_2] : memref<8x16xf32, #tpu.memory_space<vmem>>, vector<8x16xf32>
    %cst = arith.constant dense<0.000000e+00> : vector<8x128xf32>
    %2 = tpu.matmul %1, %0, %cst {dimension_numbers = #tpu.dot_dimension_numbers<[1], [1], [0], [0], [0, 0, 1, 0], [], []>} : vector<8x16xf32>, vector<128x16xf32>, vector<8x128xf32> -> vector<8x128xf32>
    %c0_3 = arith.constant 0 : index
    %c0_4 = arith.constant 0 : index
    %3 = vector.load %arg3[%c0_3, %c0_4] : memref<8x1xf32, #tpu.memory_space<vmem>>, vector<8x1xf32>
    %4 = vector.broadcast %3 : vector<8x1xf32> to vector<8x128xf32>
    %5 = arith.addf %2, %4 : vector<8x128xf32>
    %cst_5 = arith.constant 0.000000e+00 : f32
    %6 = vector.broadcast %cst_5 : f32 to vector<8x128xf32>
    %7 = arith.maximumf %5, %6 : vector<8x128xf32>
    %c0_6 = arith.constant 0 : index
    %c0_7 = arith.constant 0 : index
    %8 = vector.load %arg4[%c0_6, %c0_7] : memref<4x8xf32, #tpu.memory_space<vmem>>, vector<4x8xf32>
    %cst_8 = arith.constant dense<0.000000e+00> : vector<4x128xf32>
    %9 = tpu.matmul %8, %7, %cst_8 {dimension_numbers = #tpu.dot_dimension_numbers<[1], [0], [0], [1], [0, 0, 1, 1], [], []>} : vector<4x8xf32>, vector<8x128xf32>, vector<4x128xf32> -> vector<4x128xf32>
    %c0_9 = arith.constant 0 : index
    %c0_10 = arith.constant 0 : index
    %10 = vector.load %arg5[%c0_9, %c0_10] : memref<4x1xf32, #tpu.memory_space<vmem>>, vector<4x1xf32>
    %11 = vector.broadcast %10 : vector<4x1xf32> to vector<4x128xf32>
    %12 = arith.addf %9, %11 : vector<4x128xf32>
    %cst_11 = arith.constant 0.000000e+00 : f32
    %13 = vector.broadcast %cst_11 : f32 to vector<4x128xf32>
    %14 = arith.maximumf %12, %13 : vector<4x128xf32>
    %c0_12 = arith.constant 0 : index
    %c0_13 = arith.constant 0 : index
    %15 = vector.load %arg6[%c0_12, %c0_13] : memref<8x4xf32, #tpu.memory_space<vmem>>, vector<8x4xf32>
    %cst_14 = arith.constant dense<0.000000e+00> : vector<8x128xf32>
    %16 = tpu.matmul %15, %14, %cst_14 {dimension_numbers = #tpu.dot_dimension_numbers<[1], [0], [0], [1], [0, 0, 1, 1], [], []>} : vector<8x4xf32>, vector<4x128xf32>, vector<8x128xf32> -> vector<8x128xf32>
    %c0_15 = arith.constant 0 : index
    %c0_16 = arith.constant 0 : index
    %17 = vector.load %arg7[%c0_15, %c0_16] : memref<8x1xf32, #tpu.memory_space<vmem>>, vector<8x1xf32>
    %18 = vector.broadcast %17 : vector<8x1xf32> to vector<8x128xf32>
    %19 = arith.addf %16, %18 : vector<8x128xf32>
    %cst_17 = arith.constant dense<0xFF800000> : vector<128xf32>
    %20 = vector.multi_reduction <maximumf>, %19, %cst_17 [0] : vector<8x128xf32> to vector<128xf32>
    %21 = vector.shape_cast %20 : vector<128xf32> to vector<1x128xf32>
    %22 = vector.broadcast %21 : vector<1x128xf32> to vector<8x128xf32>
    %23 = arith.subf %19, %22 : vector<8x128xf32>
    %24 = math.exp %23 : vector<8x128xf32>
    %cst_18 = arith.constant dense<0.000000e+00> : vector<128xf32>
    %25 = vector.multi_reduction <add>, %24, %cst_18 [0] : vector<8x128xf32> to vector<128xf32>
    %26 = vector.shape_cast %25 : vector<128xf32> to vector<1x128xf32>
    %27 = vector.broadcast %26 : vector<1x128xf32> to vector<8x128xf32>
    %28 = arith.divf %24, %27 : vector<8x128xf32>
    %c0_19 = arith.constant 0 : index
    %c0_20 = arith.constant 0 : index
    %29 = vector.load %arg8[%c0_19, %c0_20] : memref<8x128xf32, #tpu.memory_space<vmem>>, vector<8x128xf32>
    tpu.vector_store %arg8[%c0_19, %c0_20], %28 {strides = array<i32>} : memref<8x128xf32, #tpu.memory_space<vmem>>, vector<8x128xf32>,
    return
  }
  func.func @transform_0(%arg0: i32) -> (i32, i32) {
    %c0_i32 = arith.constant 0 : i32
    %c0_i32_0 = arith.constant 0 : i32
    return %arg0, %c0_i32 : i32, i32
  }
  func.func @transform_1(%arg0: i32) -> (i32, i32) {
    %c0_i32 = arith.constant 0 : i32
    %c0_i32_0 = arith.constant 0 : i32
    %c0_i32_1 = arith.constant 0 : i32
    return %c0_i32, %c0_i32_0 : i32, i32
  }
  func.func @transform_2(%arg0: i32) -> (i32, i32) {
    %c0_i32 = arith.constant 0 : i32
    %c0_i32_0 = arith.constant 0 : i32
    %c0_i32_1 = arith.constant 0 : i32
    return %c0_i32, %c0_i32_0 : i32, i32
  }
  func.func @transform_3(%arg0: i32) -> (i32, i32) {
    %c0_i32 = arith.constant 0 : i32
    %c0_i32_0 = arith.constant 0 : i32
    %c0_i32_1 = arith.constant 0 : i32
    return %c0_i32, %c0_i32_0 : i32, i32
  }
  func.func @transform_4(%arg0: i32) -> (i32, i32) {
    %c0_i32 = arith.constant 0 : i32
    %c0_i32_0 = arith.constant 0 : i32
    %c0_i32_1 = arith.constant 0 : i32
    return %c0_i32, %c0_i32_0 : i32, i32
  }
  func.func @transform_5(%arg0: i32) -> (i32, i32) {
    %c0_i32 = arith.constant 0 : i32
    %c0_i32_0 = arith.constant 0 : i32
    %c0_i32_1 = arith.constant 0 : i32
    return %c0_i32, %c0_i32_0 : i32, i32
  }
  func.func @transform_6(%arg0: i32) -> (i32, i32) {
    %c0_i32 = arith.constant 0 : i32
    %c0_i32_0 = arith.constant 0 : i32
    %c0_i32_1 = arith.constant 0 : i32
    return %c0_i32, %c0_i32_0 : i32, i32
  }
  func.func @transform_7(%arg0: i32) -> (i32, i32) {
    %c0_i32 = arith.constant 0 : i32
    %c0_i32_0 = arith.constant 0 : i32
    return %c0_i32, %arg0 : i32, i32
  }
}

</mosaic_0001>

<bundles_post_ra>
// kernel: chromosome_forward.1
= control target key start
LH: loop header
LB: loop body
LE: loop exit
PB: predicated region body
PF: predicated region fallthrough
CT: control target
= control target key end

     0   :  { %12 = vsyncpa [#allocation3], 0  ;;  %s826_s0 = inlined_call_operand.hbm [shape: f32[8,16], index: 0, kind: input, shape index: {}]   ;;  %s827_s1 = inlined_call_operand.hbm [shape: f32[8,16], index: 1, kind: input, shape index: {}]   ;;  %s828_s2 = inlined_call_operand.hbm [shape: f32[8,1], index: 2, kind: input, shape index: {}]   ;;  %s829_s3 = inlined_call_operand.hbm [shape: f32[4,8], index: 3, kind: input, shape index: {}]   ;;  %s830_s4 = inlined_call_operand.hbm [shape: f32[4,1], index: 4, kind: input, shape index: {}]   ;;  %s831_s5 = inlined_call_operand.vmem [shape: f32[8,4], index: 5, kind: input, shape index: {}]   ;;  %s832_s6 = inlined_call_operand.vmem [shape: f32[8,1], index: 6, kind: input, shape index: {}]   ;;  %s833_s7 = inlined_call_operand.vmem [shape: f32[8,8], index: 7, kind: output, shape index: {}]  }
   0x1   :  { %13 = vsyncpa [#allocation5], 0 }
   0x2   :  { %14 = vsyncpa [#allocation8], 0 }
   0x3   :  { %19 = vsyncadd [#allocation3], 1920  ;;  %s675_s24 = smov [#allocation4]   ;;  %s676_s26 = smov [#allocation7]  }
   0x4   :  { %s33_s25 = sshll.u32 %s675_s24, 4  ;;  %s53_s27 = sshll.u32 %s676_s26, 4  ;;  %s34_s25 = int_to_ptr.vmem [resolvable:$true] %s33_s25  ;;  %s54_s27 = int_to_ptr.vmem [resolvable:$true] %s53_s27 }
   0x5   :  { %s559_s30 = scalar_lea.hbm %s827_s1, 128 }
   0x6   :  { %p560_p0 = scmp.ne.s32.totalorder %s827_s1, %s559_s30  ;;  %p563_p1 = scmp.lt.u32.totalorder %s559_s30, %s827_s1 }
   0x8   :  { %p565_p2 = pnand %p563_p1, %p560_p0 }
   0xa   :  { %568 = shalt.err (!%p565_p2)
}
   0xb   :  { %s569_s12 = scalar_lea.vmem %s34_s25, 128  ;;  %p574_p4 = scmp.lt.s32.totalorder %s34_s25, %s34_s25 }
   0xc   :  { %p570_p3 = scmp.ne.s32.totalorder %s34_s25, %s569_s12  ;;  %p575_p5 = scmp.lt.s32.totalorder %s569_s12, %s569_s12 }
   0xe   :  { %p576_p6 = por %p575_p5, %p574_p4 }
  0x10   :  { %p577_p7 = pnand %p576_p6, %p570_p3 }
  0x12   :  { %580 = shalt.err (!%p577_p7)
}
  0x13   :  { %36 = dma.hbm_to_vmem [thread:$0]  %s827_s1, 128, %s34_s25, [#allocation5]  }
  0x14   :  { %s581_s17 = scalar_lea.hbm %s829_s3, 64 }
  0x15   :  { %p582_p8 = scmp.ne.s32.totalorder %s829_s3, %s581_s17  ;;  %p585_p9 = scmp.lt.u32.totalorder %s581_s17, %s829_s3 }
  0x17   :  { %p587_p10 = pnand %p585_p9, %p582_p8 }
  0x19   :  { %590 = shalt.err (!%p587_p10)
}
  0x1a   :  { %s591_s22 = scalar_lea.vmem %s54_s27, 64  ;;  %p596_p12 = scmp.lt.s32.totalorder %s54_s27, %s54_s27 }
  0x1b   :  { %p592_p11 = scmp.ne.s32.totalorder %s54_s27, %s591_s22  ;;  %p597_p13 = scmp.lt.s32.totalorder %s591_s22, %s591_s22 }
  0x1d   :  { %p598_p0 = por %p597_p13, %p596_p12 }
  0x1f   :  { %p599_p1 = pnand %p598_p0, %p592_p11 }
  0x21   :  { %602 = shalt.err (!%p599_p1)
}
  0x22   :  { %56 = dma.hbm_to_vmem [thread:$0]  %s829_s3, 64, %s54_s27, [#allocation8]  }
  0x23   :  { %s677_s24 = smov [#allocation2]   ;;  %s603_s29 = scalar_lea.hbm %s826_s0, 128 }
  0x24   :  { %s20_s25 = sshll.u32 %s677_s24, 4  ;;  %p604_p2 = scmp.ne.s32.totalorder %s826_s0, %s603_s29  ;;  %s21_s25 = int_to_ptr.vmem [resolvable:$true] %s20_s25 }
  0x25   :  { %p607_p3 = scmp.lt.u32.totalorder %s603_s29, %s826_s0 }
  0x27   :  { %p609_p4 = pnand %p607_p3, %p604_p2 }
  0x29   :  { %612 = shalt.err (!%p609_p4)
}
  0x2a   :  { %s613_s11 = scalar_lea.vmem %s21_s25, 128  ;;  %s617_s3 = scalar_lea.vmem %s21_s25, 2048 }
  0x2b   :  { %p614_p5 = scmp.ne.s32.totalorder %s21_s25, %s613_s11  ;;  %p618_p6 = scmp.lt.s32.totalorder %s21_s25, %s21_s25 }
  0x2c   :  { %p619_p7 = scmp.lt.s32.totalorder %s617_s3, %s613_s11 }
  0x2e   :  { %p620_p8 = por %p619_p7, %p618_p6 }
  0x30   :  { %p621_p9 = pnand %p620_p8, %p614_p5 }
  0x32   :  { %624 = shalt.err (!%p621_p9)
}
  0x33   :  { %s678_s27 = smov 128   ;;  %s679_s12 = smov 8  }
  0x34   :  { %26 = dma.hbm_to_vmem [thread:$0]  %s826_s0, 128, %s21_s25, [#allocation3], %s678_s27, %s678_s27, %s679_s12  }
  0x35   :  { %s680_s15 = smov [#allocation6]   ;;  %s681_s17 = smov [#allocation9]  }
  0x36   :  { %s43_s16 = sshll.u32 %s680_s15, 4  ;;  %s63_s18 = sshll.u32 %s681_s17, 4  ;;  %s44_s16 = int_to_ptr.vmem [resolvable:$true] %s43_s16  ;;  %s64_s18 = int_to_ptr.vmem [resolvable:$true] %s63_s18 }
  0x37   :  { %s625_s21 = scalar_lea.hbm %s828_s2, 128 }
  0x38   :  { %p626_p10 = scmp.ne.s32.totalorder %s828_s2, %s625_s21  ;;  %p629_p11 = scmp.lt.u32.totalorder %s625_s21, %s828_s2 }
  0x3a   :  { %p631_p12 = pnand %p629_p11, %p626_p10 }
  0x3c   :  { %634 = shalt.err (!%p631_p12)
}
  0x3d   :  { %s635_s0 = scalar_lea.vmem %s44_s16, 128  ;;  %p640_p0 = scmp.lt.s32.totalorder %s44_s16, %s44_s16 }
  0x3e   :  { %p636_p13 = scmp.ne.s32.totalorder %s44_s16, %s635_s0  ;;  %p641_p1 = scmp.lt.s32.totalorder %s635_s0, %s635_s0 }
  0x40   :  { %p642_p2 = por %p641_p1, %p640_p0 }
  0x42   :  { %p643_p3 = pnand %p642_p2, %p636_p13 }
  0x44   :  { %646 = shalt.err (!%p643_p3)
}
  0x45   :  { %46 = dma.hbm_to_vmem [thread:$0]  %s828_s2, 128, %s44_s16, [#allocation5]  }
  0x46   :  { %s647_s30 = scalar_lea.hbm %s830_s4, 64 }
  0x47   :  { %p648_p4 = scmp.ne.s32.totalorder %s830_s4, %s647_s30  ;;  %p651_p5 = scmp.lt.u32.totalorder %s647_s30, %s830_s4 }
  0x49   :  { %p653_p6 = pnand %p651_p5, %p648_p4 }
  0x4b   :  { %656 = shalt.err (!%p653_p6)
}
  0x4c   :  { %s657_s3 = scalar_lea.vmem %s64_s18, 64  ;;  %p662_p8 = scmp.lt.s32.totalorder %s64_s18, %s64_s18 }
  0x4d   :  { %p658_p7 = scmp.ne.s32.totalorder %s64_s18, %s657_s3  ;;  %p663_p9 = scmp.lt.s32.totalorder %s657_s3, %s657_s3 }
  0x4f   :  { %p664_p10 = por %p663_p9, %p662_p8 }
  0x51   :  { %p665_p11 = pnand %p664_p10, %p658_p7 }
  0x53   :  { %668 = shalt.err (!%p665_p11)
}
  0x54   :  { %66 = dma.hbm_to_vmem [thread:$0]  %s830_s4, 64, %s64_s18, [#allocation8]  }
  0x55   :  { %669 = dma.done.wait [#allocation3], 2048  }
  0x56   :  { %670 = vsyncadd [#allocation3], 4294965248 }
  0x57   :  { %671 = dma.done.wait [#allocation5], 256  }
  0x58   :  { %672 = vsyncadd [#allocation5], 4294967040 }
  0x59   :  { %673 = dma.done.wait [#allocation8], 128  }
  0x5a   :  { %674 = vsyncadd [#allocation8], 4294967168  ;;  %v682_v0 = vmov 0.0|0.0   ;;  %vm683_vm0 = vmmov 0   ;;  %v684_v1 = vmov 0.0   ;;  %v685_v2 = vmov 0  }
  0x5b   :  { %510 = vmatprep.subr.bf16.mxu0 %v682_v0  ;;  %497 = vmatprep.mubr.msk.f32.mxu0 %vm683_vm0, %v684_v1  ;;  %vm109_vm1 = vcmask 130048   ;;  %v86_v3 = vld [vmem:[#allocation2] sm:$0xff]  ;;  %v87_v4 = vld [vmem:[#allocation2 + $0x8] sm:$0xff]  ;;  %v88_v7 = vld [vmem:[#allocation2 + $0x10] sm:$0xff]  ;;  %vm239_vm3 = vcmask 64512   ;;  %vm325_vm4 = vcmask 1043456  }
  0x5c   :  { %553 = vset.pattern.permute.xlu0 %v685_v2  ;;  %500 = vmatprep.subr.mxu1 %v684_v1  ;;  %vm793_vm2 = vmpackc.low %vm109_vm1, %vm109_vm1  ;;  %v511_v6 = vpack.c.bf16 %v87_v4, %v86_v3  ;;  %v89_v8 = vld [vmem:[#allocation2 + $0x18] sm:$0xff]  ;;  %v103_v9 = vld [vmem:[#allocation6] sm:$0xff]  ;;  %vm321_vm5 = vcmask 31744  }
  0x5d   :  { %502 = vmatprep.mubr.msk.f32.mxu1 %vm683_vm0, %v684_v1  ;;  %554 = vset.pattern.permute.xlu1 %v685_v2  ;;  %v515_v10 = vpack.c.bf16 %v89_v8, %v88_v7  ;;  %v233_v11 = vld [vmem:[#allocation9] sm:$0xf]  ;;  %v90_v12 = vld [vmem:[#allocation2 + $0x20] sm:$0xff]  ;;  %v91_v13 = vld [vmem:[#allocation2 + $0x28] sm:$0xff] }
  0x5e   :  { %513 = vmatpush3.bf16.xpose.msk.msra.mxu0 %vm793_vm2, %v511_v6  ;;  %106 = vperm.xlu0 %553, %v103_v9   ;;  %v519_v14 = vpack.c.bf16 %v91_v13, %v90_v12  ;;  %v92_v15 = vld [vmem:[#allocation2 + $0x30] sm:$0xff]  ;;  %v93_v16 = vld [vmem:[#allocation2 + $0x38] sm:$0xff]  ;;  %v94_v18 = vld [vmem:[#allocation2 + $0x40] sm:$0xff] }
  0x5f   :  { %514 = vmatprep.subr.bf16.mxu0 %v682_v0  ;;  %v523_v17 = vpack.c.bf16 %v93_v16, %v92_v15  ;;  %v95_v19 = vld [vmem:[#allocation2 + $0x48] sm:$0xff]  ;;  %v96_v21 = vld [vmem:[#allocation2 + $0x50] sm:$0xff]  ;;  %v97_v22 = vld [vmem:[#allocation2 + $0x58] sm:$0xff] }
  0x60   :  { %v527_v20 = vpack.c.bf16 %v95_v19, %v94_v18  ;;  %v531_v23 = vpack.c.bf16 %v97_v22, %v96_v21  ;;  %v98_v24 = vld [vmem:[#allocation2 + $0x60] sm:$0xff]  ;;  %v99_v25 = vld [vmem:[#allocation2 + $0x68] sm:$0xff]  ;;  %v100_v27 = vld [vmem:[#allocation2 + $0x70] sm:$0xff] }
  0x61   :  { %v535_v26 = vpack.c.bf16 %v99_v25, %v98_v24  ;;  %v101_v28 = vld [vmem:[#allocation2 + $0x78] sm:$0xff]  ;;  %v102_v30 = vld [vmem:[#allocation4] sm:$0xff]  ;;  %v232_v36 = vld [vmem:[#allocation7] sm:$0xf] }
  0x62   :  { %236 = vperm.xlu0 %553, %v233_v11   ;;  %v539_v29 = vpack.c.bf16 %v101_v28, %v100_v27  ;;  %v315_v37 = vld [vmem:[%s832_s6] sm:$0xff] }
  0x63   :  { %318 = vperm.xlu1 %554, %v315_v37   ;;  %v314_v43 = vld [vmem:[%s831_s5] sm:$0xff] }
  0x66   :  { %517 = vmatpush3.bf16.xpose.msk.msra.mxu0 %vm793_vm2, %v515_v10 }
  0x67   :  { %518 = vmatprep.subr.bf16.mxu0 %v682_v0 }
  0x6e   :  { %521 = vmatpush3.bf16.xpose.msk.msra.mxu0 %vm793_vm2, %v519_v14 }
  0x6f   :  { %522 = vmatprep.subr.bf16.mxu0 %v682_v0 }
  0x76   :  { %525 = vmatpush3.bf16.xpose.msk.msra.mxu0 %vm793_vm2, %v523_v17 }
  0x77   :  { %526 = vmatprep.subr.bf16.mxu0 %v682_v0 }
  0x7e   :  { %529 = vmatpush3.bf16.xpose.msk.msra.mxu0 %vm793_vm2, %v527_v20 }
  0x7f   :  { %530 = vmatprep.subr.bf16.mxu0 %v682_v0 }
  0x86   :  { %533 = vmatpush3.bf16.xpose.msk.msra.mxu0 %vm793_vm2, %v531_v23 }
  0x87   :  { %534 = vmatprep.subr.bf16.mxu0 %v682_v0 }
  0x8e   :  { %537 = vmatpush3.bf16.xpose.msk.msra.mxu0 %vm793_vm2, %v535_v26 }
  0x8f   :  { %538 = vmatprep.subr.bf16.mxu0 %v682_v0 }
  0x96   :  { %541 = vmatpush3.bf16.xpose.msk.msra.mxu0 %vm793_vm2, %v539_v29 }
  0x9d   :  { %498 = vmatmul.mubr.msk.f32.vlgmr.msra.gmra.mrb[0].mxu0 %vm109_vm1, %v102_v30 }
  0xdd   :  { %v107_v31 = vpop.permute.xlu0 %106 }
  0xe1   :  { %v237_v38 = vpop.permute.xlu0 %236 }
  0xe2   :  { %v319_v44 = vpop.permute.xlu1 %318 }
 0x170   :  { %v227_v32 = vpop.f32.mrb[0].mxu0 }
 0x171   :  { %v228_v33 = vadd.f32 %v227_v32, %v107_v31  ;;  %v499_v34 = vpop.f32.mrb[1].mxu0 }
 0x173   :  { %v231_v35 = vmax.f32 %v228_v33, 0.0 }
 0x175   :  { %501 = vmatpush3.msra.mxu1 %v231_v35 }
 0x176   :  { %503 = vmatmul.mubr.msk.f32.vlgmr.msra.gmra.mrb[0].mxu1 %vm239_vm3, %v232_v36  ;;  %505 = vmatprep.subr.mxu1 %v684_v1 }
 0x177   :  { %507 = vmatprep.mubr.msk.f32.mxu1 %vm683_vm0, %v684_v1 }
 0x249   :  { %v309_v39 = vpop.f32.mrb[0].mxu1 }
 0x24a   :  { %v310_v40 = vadd.f32 %v309_v39, %v237_v38  ;;  %v504_v41 = vpop.f32.mrb[1].mxu1 }
 0x24c   :  { %v313_v42 = vmax.f32 %v310_v40, 0.0 }
 0x24e   :  { %506 = vmatpush3.msk.msra.mxu1 %vm325_vm4, %v313_v42 }
 0x24f   :  { %508 = vmatmul.mubr.msk.f32.vlgmr.msra.gmra.mrb[2].mxu1 %vm321_vm5, %v314_v43 }
 0x322   :  { %v395_v45 = vpop.f32.mrb[2].mxu1 }
 0x323   :  { %v396_v46 = vadd.f32 %v395_v45, %v319_v44  ;;  %v509_v47 = vpop.f32.mrb[3].mxu1 }
 0x325   :  { %v399_v48 = vrot.slane %v396_v46, 4 }
 0x327   :  { %v400_v49 = vmax.f32 %v396_v46, %v399_v48 }
 0x329   :  { %v401_v50 = vrot.slane %v400_v49, 2 }
 0x32b   :  { %v402_v51 = vmax.f32 %v400_v49, %v401_v50 }
 0x32d   :  { %v403_v52 = vrot.slane %v402_v51, 1 }
 0x32f   :  { %v404_v53 = vmax.f32 %v402_v51, %v403_v52 }
 0x331   :  { %v405_v54 = vsub.f32 %v396_v46, %v404_v53 }
 0x333   :  { %v406_v55 = vmul.f32 1.442695, %v405_v54 }
 0x335   :  { %555 = vpow2.f32 %v406_v55 }
 0x33f   :  { %v556_v56 = vpop.eup %555 }
 0x340   :  { %v408_v57 = vrot.slane %v556_v56, 4 }
 0x342   :  { %v409_v58 = vadd.f32 %v556_v56, %v408_v57 }
 0x344   :  { %v410_v59 = vrot.slane %v409_v58, 2 }
 0x346   :  { %v411_v60 = vadd.f32 %v410_v59, %v409_v58 }
 0x348   :  { %v412_v61 = vrot.slane %v411_v60, 1 }
 0x34a   :  { %v413_v62 = vadd.f32 %v412_v61, %v411_v60 }
 0x34c   :  { %557 = vrcp.f32 %v413_v62 }
 0x356   :  { %v558_v63 = vpop.eup %557 }
 0x357   :  { %v415_v0 = vmul.f32 %v558_v63, %v556_v56 }
 0x359   :  { %416 = vst [vmem:[%s833_s7] sm:$0xff] %v415_v0 }
 0x35a   :  { %421 = vsyncpa [#allocation3], 1 }
 0x35b   :  { %422 = vsyncpa [#allocation5], 1 }
 0x35c   :  { %423 = vsyncpa [#allocation8], 1 }

</bundles_post_ra>
